<compile_context>
chip_gen: v5e
topology: v5e:2x2
jax: 0.10.0
libtpu: 0.0.40
codegen_flags: <defaults>
</compile_context>

<pallas_src>
import functools

import numpy as np
import jax
import jax.numpy as jnp
from jax import lax
from jax.experimental import pallas as pl
from jax.experimental.pallas import tpu as pltpu

# Small, self-consistent STFT configuration (stands in for filter_length /
# hop_length of the original _stft).
N_FFT = 16
HOP = 4
N_FREQ = N_FFT // 2 + 1   # 9
F_PAD = 16                # freq axis padded to a sublane-tile-aligned 16 rows
Q = N_FFT // HOP          # 4 frame rows per layout row / frames overlapping a sample

# Frames per grid step (lane-dense, multiple of 128).  8192 keeps the live value
# intermediates (~4 MiB) well under v5e's 16 MiB default scoped VMEM while each
# step still moves ~1.5 MiB of HBM >> the ~0.35 us fixed per-step overhead.
MAX_TILE_T = 8192


def _round_up(x, m):
    return ((x + m - 1) // m) * m


# ----------------------------------------------------------------------------
# pltpu.roll direction probe: makes the lane shifts convention-independent.
# ----------------------------------------------------------------------------
_ROLL_SIGN = None


def _roll_probe_kernel(x_ref, o_ref):
    o_ref[...] = pltpu.roll(x_ref[...], shift=1, axis=1)


def _get_roll_sign():
    """Returns sign s such that pltpu.roll(x, s*k, axis)[..., j] == x[..., (j-k) % n]."""
    global _ROLL_SIGN
    if _ROLL_SIGN is not None:
        return _ROLL_SIGN
    x = jnp.broadcast_to(jnp.arange(128, dtype=jnp.float32), (8, 128))
    out = np.asarray(
        pl.pallas_call(
            _roll_probe_kernel,
            out_shape=jax.ShapeDtypeStruct((8, 128), jnp.float32),
        )(x))
    if out[0, 1] == 0.0 and out[0, 0] == 127.0:
        _ROLL_SIGN = 1        # jnp.roll convention: out[j] = x[(j - shift) % n]
    elif out[0, 0] == 1.0:
        _ROLL_SIGN = -1       # opposite convention: out[j] = x[(j + shift) % n]
    else:
        raise RuntimeError("could not determine pltpu.roll direction")
    return _ROLL_SIGN


def _roll_lanes(x, k, sign):
    """out[..., j] = x[..., (j - k) % n], independent of pltpu.roll's convention."""
    n = x.shape[-1]
    s = (sign * k) % n
    if s == 0:
        return x
    return pltpu.roll(x, shift=s, axis=x.ndim - 1)


# ----------------------------------------------------------------------------
# Window-folded, freq-padded fused DFT weights (packed d-major for the kernel).
# ----------------------------------------------------------------------------
def _make_weights(noise_col, strength):
    n = np.arange(N_FFT)
    k = np.arange(N_FREQ)
    win = 0.5 - 0.5 * np.cos(2.0 * np.pi * n / N_FFT)          # periodic Hann
    ang = 2.0 * np.pi * np.outer(k, n) / N_FFT                  # (F, N)

    # forward rSTFT:  spec = W_fwd @ frames ; rows [0:F) = Re, [F_PAD:F_PAD+F) = Im
    wf = np.zeros((2 * F_PAD, N_FFT), np.float64)
    wf[:N_FREQ, :] = np.cos(ang) * win[None, :]                 # analysis window folded in
    wf[F_PAD:F_PAD + N_FREQ, :] = -np.sin(ang) * win[None, :]

    # inverse rSTFT (+ synthesis window folded in):  frames_out = W_inv @ [Re; Im]
    dup = np.full((N_FREQ,), 2.0)
    dup[0] = 1.0
    dup[-1] = 1.0
    wi = np.zeros((N_FFT, 2 * F_PAD), np.float64)
    wi[:, :N_FREQ] = win[:, None] * (dup[None, :] * np.cos(ang.T)) / N_FFT
    wi[:, F_PAD:F_PAD + N_FREQ] = win[:, None] * (-dup[None, :] * np.sin(ang.T)) / N_FFT

    # d-major packing: the kernel only ever indexes the *leading* axis of these.
    wf_pack = np.stack([wf[:, d * HOP:(d + 1) * HOP] for d in range(Q)], 0)   # (Q, 32, 4)
    wi_re = np.stack([wi[d * HOP:(d + 1) * HOP, :F_PAD] for d in range(Q)], 0)  # (Q, 4, 16)
    wi_im = np.stack([wi[d * HOP:(d + 1) * HOP, F_PAD:] for d in range(Q)], 0)  # (Q, 4, 16)

    noise = np.zeros((F_PAD, 1), np.float32)
    noise[:N_FREQ, 0] = np.asarray(noise_col, np.float64).reshape(-1) * strength
    return (wf_pack.astype(np.float32), wi_re.astype(np.float32),
            wi_im.astype(np.float32), noise, win)


# ----------------------------------------------------------------------------
# Kernel: in-kernel framing -> windowed STFT -> spectral gain -> windowed ISTFT
#         -> in-kernel overlap-add, all in a time-on-lanes layout.
# ----------------------------------------------------------------------------
def _denoiser_kernel(a_ref, nxt_ref, wf_ref, noise_ref, wi_re_ref, wi_im_ref,
                     main_ref, spill_ref, *, t_valid, roll_sign):
    tile_t = a_ref.shape[1]
    col = lax.broadcasted_iota(jnp.int32, (HOP, tile_t), 1)

    a = a_ref[...]       # (HOP, tile_t) : a[r, t] = padded[(off + t) * HOP + r]
    nxt = nxt_ref[...]   # (HOP, tile_t) : next time tile (3-column halo source)

    # ---- forward windowed rSTFT; frame row (d*HOP + r) at time t is a[r, t+d] ----
    spec = jnp.dot(wf_ref[0], a, preferred_element_type=jnp.float32)   # (2*F_PAD, tile_t)
    for d in range(1, Q):
        cur = _roll_lanes(a, -d, roll_sign)       # a[:, (t+d) mod tile_t]
        halo = _roll_lanes(nxt, -d, roll_sign)    # next tile's first cols land at t >= tile_t-d
        shifted = jnp.where(col < tile_t - d, cur, halo)
        spec = spec + jnp.dot(wf_ref[d], shifted, preferred_element_type=jnp.float32)

    re = spec[:F_PAD, :]
    im = spec[F_PAD:, :]

    # ---- gain = max(1 - noise*strength / |D|, 0)  ==  clamp(|D| - ns, 0) * phase / |D| ----
    msq = re * re + im * im
    gain = jnp.maximum(1.0 - noise_ref[...] * lax.rsqrt(msq + 1e-30), 0.0)
    re2 = re * gain
    im2 = im * gain

    # ---- inverse windowed rSTFT + in-kernel overlap-add to a (HOP, tile_t) slab ----
    off = pl.program_id(0) * tile_t
    valid = (col + off) < t_valid                 # drop frames >= T (partial tail tile)
    main = jnp.zeros((HOP, tile_t), jnp.float32)
    spill = jnp.zeros((HOP, tile_t), jnp.float32)
    for d in range(Q):
        chunk = (jnp.dot(wi_re_ref[d], re2, preferred_element_type=jnp.float32)
                 + jnp.dot(wi_im_ref[d], im2, preferred_element_type=jnp.float32))
        chunk = jnp.where(valid, chunk, 0.0)      # ISTFT frame rows d*HOP .. d*HOP+HOP
        if d == 0:
            main = main + chunk
        else:
            rolled = _roll_lanes(chunk, d, roll_sign)     # chunk[:, (u - d) mod tile_t]
            main = main + jnp.where(col >= d, rolled, 0.0)
            spill = spill + jnp.where(col < d, rolled, 0.0)   # wraps into the next tile
    main_ref[...] = main
    spill_ref[...] = spill[:, :128]               # only the first 3 columns are nonzero


# ----------------------------------------------------------------------------
# Wrapper
# ----------------------------------------------------------------------------
def denoise(audio, noise_magnitude, strength=10.0):
    """audio: [L] float32; noise_magnitude: [N_FREQ, 1] float32."""
    L = audio.shape[0]
    pad = N_FFT // 2
    wf_pack, wi_re, wi_im, noise_scaled, win = _make_weights(noise_magnitude[:, 0], strength)
    roll_sign = _get_roll_sign()

    # --- glue: center/reflect padding (librosa stft, center=True) ---
    padded = jnp.pad(audio.astype(jnp.float32), (pad, pad), mode="reflect")
    P = padded.shape[0]
    T = 1 + (P - N_FFT) // HOP

    # >=2 grid steps when possible (v7x megacore sharding); large lane-dense tiles.
    tile_t = max(128, min(MAX_TILE_T, _round_up(-(-T // 2), 128)))
    t_pad = _round_up(T, tile_t)
    num_tiles = t_pad // tile_t
    w_layout = t_pad + tile_t                     # room for the "next tile" halo input

    # (HOP, w_layout) audio layout: layout[r, t] = padded[t*HOP + r]  (single pass)
    padded_ext = jnp.pad(padded, (0, w_layout * HOP - P))
    layout = padded_ext.reshape(w_layout, HOP).T

    main, spill = pl.pallas_call(
        functools.partial(_denoiser_kernel, t_valid=T, roll_sign=roll_sign),
        out_shape=(jax.ShapeDtypeStruct((HOP, t_pad), jnp.float32),
                   jax.ShapeDtypeStruct((HOP, num_tiles * 128), jnp.float32)),
        grid=(num_tiles,),
        in_specs=[
            pl.BlockSpec((HOP, tile_t), lambda i: (0, i)),        # current time tile
            pl.BlockSpec((HOP, tile_t), lambda i: (0, i + 1)),    # next tile (halo source)
            pl.BlockSpec((Q, 2 * F_PAD, HOP), lambda i: (0, 0, 0)),  # fused fwd DFT (d-major)
            pl.BlockSpec((F_PAD, 1), lambda i: (0, 0)),              # noise * strength
            pl.BlockSpec((Q, HOP, F_PAD), lambda i: (0, 0, 0)),      # fused inv DFT (real)
            pl.BlockSpec((Q, HOP, F_PAD), lambda i: (0, 0, 0)),      # fused inv DFT (imag)
        ],
        out_specs=(pl.BlockSpec((HOP, tile_t), lambda i: (0, i)),    # OLA slab (HOP, tile_t)
                   pl.BlockSpec((HOP, 128), lambda i: (0, i))),      # 3-col spill per tile
        compiler_params=pltpu.CompilerParams(
            dimension_semantics=("parallel",)),
    )(layout, layout, jnp.asarray(wf_pack), jnp.asarray(noise_scaled),
      jnp.asarray(wi_re), jnp.asarray(wi_im))

    # --- glue: loop-free spill stitch (tile i's spill lands at columns (i+1)*tile_t..+3) ---
    spill3 = spill.reshape(HOP, num_tiles, 128)
    spill_shift = jnp.pad(spill3, ((0, 0), (1, 0), (0, tile_t - 128)))
    main3 = jnp.pad(main.reshape(HOP, num_tiles, tile_t), ((0, 0), (0, 1), (0, 0)))
    out_layout = (main3 + spill_shift).reshape(HOP, t_pad + tile_t)

    total = (T - 1) * HOP + N_FFT                 # = HOP * (T + 3)
    y = out_layout[:, :T + 3].T.reshape(-1)       # y[u*HOP + r] = out_layout[r, u]

    # window-square normalization: audio-independent constant (numpy, trace time)
    wsq = win ** 2
    wsum = np.zeros((total,), np.float64)
    for q in range(Q):
        wsum[q * HOP:q * HOP + T * HOP] += np.tile(wsq[q * HOP:(q + 1) * HOP], T)
    wsum = np.where(wsum > 1e-8, wsum, 1.0).astype(np.float32)
    y = y / jnp.asarray(wsum)
    return y[pad:pad + L]


# ----------------------------------------------------------------------------
# Independent numpy/FFT reference of the same forward pass.
# ----------------------------------------------------------------------------
def _reference_numpy(audio, noise_mag, strength):
    audio = np.asarray(audio, np.float64)
    pad = N_FFT // 2
    padded = np.pad(audio, (pad, pad), mode="reflect")
    T = 1 + (len(padded) - N_FFT) // HOP
    win = 0.5 - 0.5 * np.cos(2 * np.pi * np.arange(N_FFT) / N_FFT)
    idx = np.arange(T)[:, None] * HOP + np.arange(N_FFT)[None, :]
    frames = padded[idx]                                        # (T, N_FFT)
    D = np.fft.rfft(frames * win, axis=1)                       # (T, F)
    mag = np.abs(D)
    phase = np.exp(1j * np.angle(D))
    den = mag - np.asarray(noise_mag, np.float64).reshape(1, -1) * strength
    den = np.clip(den, 0, np.max(np.abs(den)))
    inv = np.fft.irfft(den * phase, n=N_FFT, axis=1) * win      # (T, N_FFT)
    total = (T - 1) * HOP + N_FFT
    y = np.zeros(total)
    ws = np.zeros(total)
    np.add.at(y, idx, inv)
    np.add.at(ws, idx, np.broadcast_to(win ** 2, inv.shape))
    y = y / np.where(ws > 1e-8, ws, 1.0)
    return y[pad:pad + len(audio)]


if __name__ == "__main__":
    key = jax.random.PRNGKey(0)
    k_audio, k_noise, k_audio2 = jax.random.split(key, 3)

    # Deterministic synthetic stand-in for the waveglow-derived noise profile
    # noise_magnitude[:, 0][:, None]  -> shape (N_FREQ, 1).
    # TODO(synk): the waveglow.infer(...) + _stft noise-profile construction in
    # __init__ is a full vocoder inference and is not reproduced here.
    noise_magnitude = 0.02 * jnp.abs(
        jax.random.normal(k_noise, (N_FREQ, 1), dtype=jnp.float32))
    strength = 10.0

    # small case (single grid step) and a longer case exercising the 2-tile grid,
    # the cross-tile spill stitch and the invalid-tail-frame masking.
    for num_samples, k in ((64, k_audio), (33000, k_audio2)):
        audio = jax.random.normal(k, (num_samples,), dtype=jnp.float32)
        out = jax.block_until_ready(denoise(audio, noise_magnitude, strength))
        ref = _reference_numpy(np.asarray(audio), np.asarray(noise_magnitude), strength)
        np.testing.assert_allclose(np.asarray(out), ref, rtol=1e-3, atol=2e-3)

    print("KERNEL_OK")
</pallas_src>

<mosaic_0001>
module attributes {stable_mosaic.version = 11 : i64} {
  func.func @_roll_probe_kernel(%arg0: memref<8x128xf32, #tpu.memory_space<vmem>>, %arg1: memref<8x128xf32, #tpu.memory_space<vmem>>) attributes {dimension_semantics = [], scalar_prefetch = 0 : i64, scratch_operands = 0 : i64, tpu.core_type = #tpu.core_type<tc>} {
    %c0 = arith.constant 0 : index
    %c0_0 = arith.constant 0 : index
    %0 = vector.load %arg0[%c0, %c0_0] : memref<8x128xf32, #tpu.memory_space<vmem>>, vector<8x128xf32>
    %c1_i32 = arith.constant 1 : i32
    %1 = tpu.dynamic_rotate %0 by %c1_i32 dim 1 : vector<8x128xf32>, i32 -> vector<8x128xf32>
    %c0_1 = arith.constant 0 : index
    %c0_2 = arith.constant 0 : index
    %2 = vector.load %arg1[%c0_1, %c0_2] : memref<8x128xf32, #tpu.memory_space<vmem>>, vector<8x128xf32>
    tpu.vector_store %arg1[%c0_1, %c0_2], %1 {strides = array<i32>} : memref<8x128xf32, #tpu.memory_space<vmem>>, vector<8x128xf32>,
    return
  }
}

</mosaic_0001>

<bundles_post_ra>
// kernel: tpu_custom_call.1
= control target key start
LH: loop header
LB: loop body
LE: loop exit
PB: predicated region body
PF: predicated region fallthrough
CT: control target
= control target key end

     0   :  { %6 = vsyncpa [#allocation3], 0  ;;  %s118_s0 = inlined_call_operand.hbm [shape: f32[8,128], index: 0, kind: input, shape index: {}]   ;;  %s119_s1 = inlined_call_operand.hbm [shape: f32[8,128], index: 1, kind: output, shape index: {}]  }
   0x1   :  { %7 = vsyncpa [#allocation4], 0  ;;  %s13_s8 = sshll.u32 %s118_s0, 4  ;;  %s99_s9 = smov [#allocation2]   ;;  %s14_s8 = int_to_ptr.hbm [resolvable:$true] %s13_s8 }
   0x2   :  { %s15_s10 = sshll.u32 %s99_s9, 4  ;;  %s16_s10 = int_to_ptr.vmem [resolvable:$true] %s15_s10 }
   0x3   :  { %18 = dma.hbm_to_vmem [thread:$0]  %s14_s8, 128, %s16_s10, [#allocation3]  }
   0x4   :  { %95 = dma.done.wait [#allocation3], 128  }
   0x5   :  { %96 = vsyncadd [#allocation3], 4294967168  ;;  %v23_v0 = vld [vmem:[#allocation2] sm:$0xff]  ;;  %s100_s11 = smov 1   ;;  %s101_s12 = smov [#allocation5]  }
   0x6   :  { %24 = vrot.lane.b32.xlu0 %v23_v0, %s100_s11  ;;  %s32_s13 = sshll.u32 %s101_s12, 4  ;;  %s34_s16 = sshll.u32 %s119_s1, 4  ;;  %s33_s13 = int_to_ptr.vmem [resolvable:$true] %s32_s13  ;;  %s35_s16 = int_to_ptr.hbm [resolvable:$true] %s34_s16 }
  0x78   :  { %v25_v1 = vpop.permute.xlu0 %24 }
  0x79   :  { %26 = vst [vmem:[#allocation5] sm:$0xff] %v25_v1 }
  0x7a   :  { %37 = dma.vmem_to_hbm [thread:$0]  %s33_s13, 128, %s35_s16, [#allocation4]  }
  0x7b   :  { %97 = dma.done.wait [#allocation4], 128  }
  0x7c   :  { %98 = vsyncadd [#allocation4], 4294967168 }
  0x7d   :  { %42 = vsyncpa [#allocation3], 1 }
  0x7e   :  { %43 = vsyncpa [#allocation4], 1 }

</bundles_post_ra>
